<compile_context>
chip_gen: v7x
topology: tpu7x:2x2x1
jax: 0.10.0
libtpu: 0.0.40
codegen_flags: <defaults>
</compile_context>

<pallas_src>
import functools

import jax
import jax.numpy as jnp
from jax import lax
from jax.experimental import pallas as pl
from jax.experimental.pallas import tpu as pltpu

BN_EPS = 1e-5
LANE = 128                 # lane width (last dim)
DEFAULT_BATCH_TILE = 512   # rows per grid step on the gridded (no-BN) path


def _round_up(x, m):
    return ((x + m - 1) // m) * m


def _sublane(dtype):
    # native sublane packing: 8 rows for 4-byte, 16 for 2-byte, 32 for 1-byte
    return {4: 8, 2: 16, 1: 32}[jnp.dtype(dtype).itemsize]


# ------------------------------ fused kernel ------------------------------- #

def _make_mlp_kernel(layer_has_bn, final_act, n_rows, out_dim, mxu_bf16):
    """Builds the fused-MLP kernel body (layer loop unrolled at trace time)."""
    n_layers = len(layer_has_bn)
    mxu_dtype = jnp.bfloat16 if mxu_bf16 else jnp.float32

    def kernel(*refs):
        x_ref, o_ref = refs[0], refs[-1]
        layer_refs = refs[1:-1]

        h = x_ref[...].astype(jnp.float32)
        n_pad = h.shape[0]
        inv_n = jnp.float32(1.0 / n_rows)

        if any(layer_has_bn):
            # Row mask (1, n_pad): excludes sublane-padding rows from BN batch
            # stats; the masked sums run on the (otherwise idle) MXU as
            # (1,N)@(N,F) matmuls.
            mrow = (lax.broadcasted_iota(jnp.int32, (1, n_pad), 1)
                    < n_rows).astype(jnp.float32)

        idx = 0
        for s in range(n_layers):
            w = layer_refs[idx][...]
            idx += 1

            # bf16 MXU operands, f32 accumulation -> full-rate MXU on
            # v5e/v6e/v7x (f32 matmul runs multi-pass at a fraction of peak).
            y = jnp.dot(h.astype(mxu_dtype), w.astype(mxu_dtype),
                        preferred_element_type=jnp.float32)

            if layer_has_bn[s]:
                # Linear bias is a mathematical no-op under BatchNorm (mean is
                # subtracted), so it is dropped entirely (no operand, no add).
                gamma = layer_refs[idx][...]
                beta = layer_refs[idx + 1][...]
                idx += 2
                # One-pass masked moments, f32 on the MXU.
                # TODO(synk): on v5e a masked sublane reduce
                # (jnp.sum(y * mrow.T, axis=0)) may beat the M=1 MXU pushes.
                s1 = jnp.dot(mrow, y, preferred_element_type=jnp.float32)
                s2 = jnp.dot(mrow, y * y, preferred_element_type=jnp.float32)
                mean = s1 * inv_n
                var = jnp.maximum(s2 * inv_n - mean * mean, 0.0)   # clamp >= 0
                scale = gamma * lax.rsqrt(var + BN_EPS)
                shift = beta - mean * scale
                y = y * scale + shift                   # folded BN: single FMA
            else:
                b = layer_refs[idx][...]
                idx += 1
                y = y + b

            if s < n_layers - 1:                        # hidden layer
                y = jnp.maximum(y, 0.0)
            else:                                       # output layer
                if final_act == "relu":
                    y = jnp.maximum(y, 0.0)
                elif final_act == "sigmoid":
                    y = jax.nn.sigmoid(y)
                elif final_act == "softmax":
                    # Mask padded lanes before the cross-lane reduce.
                    lane_ids = lax.broadcasted_iota(jnp.int32, y.shape, 1)
                    y = jnp.where(lane_ids < out_dim, y, -1e30)
                    m = jnp.max(y, axis=-1, keepdims=True)
                    e = jnp.exp(y - m)
                    denom = jnp.sum(e, axis=-1, keepdims=True)
                    r = pl.reciprocal(denom, approx=True)   # EUP path
                    r = r * (2.0 - denom * r)               # 1 Newton step
                    y = e * r
            h = y

        o_ref[...] = h.astype(o_ref.dtype)

    return kernel


# ------------------------------ python wrappers ----------------------------- #

def init_mlp_params(key, sizes, batch_norm=True):
    """Deterministic init matching torch.nn.Linear default (U[-1/sqrt(in), 1/sqrt(in)]).

    Weights are stored pre-transposed as (in, out) so the kernel computes
    x @ W (+ b), matching torch's x @ W.T + b.
    """
    params = []
    n_layers = len(sizes) - 1
    for s in range(n_layers):
        fan_in, fan_out = sizes[s], sizes[s + 1]
        key, kw, kb = jax.random.split(key, 3)
        bound = 1.0 / (fan_in ** 0.5)
        w = jax.random.uniform(kw, (fan_in, fan_out), jnp.float32, -bound, bound)
        b = jax.random.uniform(kb, (1, fan_out), jnp.float32, -bound, bound)
        layer = {"w": w, "b": b}
        if batch_norm and s < n_layers - 1:
            layer["gamma"] = jnp.ones((1, fan_out), jnp.float32)
            layer["beta"] = jnp.zeros((1, fan_out), jnp.float32)
        params.append(layer)
    return params


def pack_mlp_params(params, batch_norm=True, mxu_bf16=True):
    """Lane-pad + cast parameters ONCE (outside the per-call path).

    Returns (operands, meta).  Biases of BN-followed hidden layers are dropped
    (mathematical no-op under BN).  Weights are stored bf16 when mxu_bf16.
    """
    w_dtype = jnp.bfloat16 if mxu_bf16 else jnp.float32
    n_layers = len(params)
    operands, layer_has_bn = [], []
    for s, layer in enumerate(params):
        fi, fo = layer["w"].shape
        fi_p, fo_p = _round_up(fi, LANE), _round_up(fo, LANE)
        has_bn = bool(batch_norm and s < n_layers - 1)
        layer_has_bn.append(has_bn)
        w_p = jnp.zeros((fi_p, fo_p), w_dtype).at[:fi, :fo].set(
            layer["w"].astype(w_dtype))
        operands.append(w_p)
        if has_bn:
            g_p = jnp.ones((1, fo_p), jnp.float32).at[:, :fo].set(
                layer["gamma"].astype(jnp.float32))
            be_p = jnp.zeros((1, fo_p), jnp.float32).at[:, :fo].set(
                layer["beta"].astype(jnp.float32))
            operands += [g_p, be_p]
        else:
            b_p = jnp.zeros((1, fo_p), jnp.float32).at[:, :fo].set(
                layer["b"].astype(jnp.float32))
            operands.append(b_p)
    meta = dict(layer_has_bn=tuple(layer_has_bn),
                out_dim=int(params[-1]["w"].shape[1]),
                mxu_bf16=bool(mxu_bf16))
    return operands, meta


@functools.partial(
    jax.jit,
    static_argnames=("layer_has_bn", "out_dim", "final_act", "mxu_bf16",
                     "batch_tile"))
def _mlp_forward_impl(x, operands, *, layer_has_bn, out_dim, final_act,
                      mxu_bf16, batch_tile):
    n, f_in = x.shape
    x_dtype = jnp.bfloat16 if mxu_bf16 else jnp.float32
    sub = _sublane(x_dtype)
    f_in_pad = _round_up(f_in, LANE)
    out_pad = _round_up(out_dim, LANE)
    any_bn = any(layer_has_bn)

    n_pad = _round_up(max(n, sub), sub)
    if any_bn or n_pad <= batch_tile:
        # BN needs whole-batch statistics -> single batch block.
        # TODO(synk): for very large N with BN, add a parallel batch grid with
        # a cross-tile (sum, sum_sq) combine pass.
        tb = n_pad
    else:
        tb = batch_tile
        n_pad = _round_up(n_pad, tb)
    grid = (n_pad // tb,)

    # Pad the input (fuses under jit); padded lanes/rows are inert.
    x_pad = jnp.zeros((n_pad, f_in_pad), x_dtype).at[:n, :f_in].set(
        x.astype(x_dtype))

    # TODO(synk): for weight-heavy MLPs keep W in HBM (memory_space=pl.ANY) and
    # manually double-buffer layer s+1's weights behind layer s's matmul.
    in_specs = [pl.BlockSpec((tb, f_in_pad), lambda i: (i, 0))]
    in_specs += [pl.BlockSpec(op.shape, lambda i: (0, 0)) for op in operands]
    out_spec = pl.BlockSpec((tb, out_pad), lambda i: (i, 0))

    # Size-derived VMEM budget: double-buffered blocks + a few f32
    # intermediates + headroom, capped below v7x's 64 MiB physical VMEM.
    max_feat = max([f_in_pad, out_pad] + [op.shape[-1] for op in operands])
    param_bytes = sum(int(op.size) * op.dtype.itemsize for op in operands)
    io_bytes = tb * f_in_pad * jnp.dtype(x_dtype).itemsize + tb * out_pad * 4
    vmem_limit = 2 * (param_bytes + io_bytes) + 4 * tb * max_feat * 4 + (8 << 20)
    vmem_limit = int(min(_round_up(vmem_limit, 1 << 20), 64 << 20))

    kernel = _make_mlp_kernel(layer_has_bn, final_act, n, out_dim, mxu_bf16)

    out = pl.pallas_call(
        kernel,
        out_shape=jax.ShapeDtypeStruct((n_pad, out_pad), jnp.float32),
        grid=grid,
        in_specs=in_specs,
        out_specs=out_spec,
        compiler_params=pltpu.CompilerParams(
            dimension_semantics=("parallel",),
            vmem_limit_bytes=vmem_limit),
    )(x_pad, *operands)

    # Slice the lane/sublane padding off (lane-dense inside the kernel).
    return out[:n, :out_dim]


def mlp_forward(x, packed, final_act=None, batch_tile=DEFAULT_BATCH_TILE):
    """Forward pass of MLP(sizes, batch_norm, final_act), fused in one kernel.

    x: (N, sizes[0]) float32.  packed: result of pack_mlp_params (call once).
    Returns (N, sizes[-1]) float32.
    """
    if final_act not in (None, "relu", "sigmoid", "softmax"):
        raise ValueError("final_act not recognized")
    operands, meta = packed
    return _mlp_forward_impl(
        x, operands,
        layer_has_bn=meta["layer_has_bn"], out_dim=meta["out_dim"],
        final_act=final_act, mxu_bf16=meta["mxu_bf16"], batch_tile=batch_tile)


# ------------------------------ pure-JAX reference -------------------------- #

def _mlp_reference(x, params, batch_norm=True, final_act=None):
    n_layers = len(params)
    h = x
    for s, layer in enumerate(params):
        y = h @ layer["w"] + layer["b"]
        if s < n_layers - 1:
            if batch_norm:
                mean = jnp.mean(y, axis=0, keepdims=True)
                var = jnp.mean((y - mean) ** 2, axis=0, keepdims=True)
                y = (layer["gamma"] * (y - mean) * jax.lax.rsqrt(var + BN_EPS)
                     + layer["beta"])
            y = jnp.maximum(y, 0.0)
        else:
            if final_act == "relu":
                y = jnp.maximum(y, 0.0)
            elif final_act == "sigmoid":
                y = jax.nn.sigmoid(y)
            elif final_act == "softmax":
                y = jax.nn.softmax(y, axis=-1)
        h = y
    return h


if __name__ == "__main__":
    key = jax.random.PRNGKey(0)

    configs = [
        # main config: MLP([16, 32, 32, 8], batch_norm=True, final_act=None);
        # batch=6 exercises sublane-padding + masked BN statistics.
        dict(sizes=[16, 32, 32, 8], batch=6, batch_norm=True, final_act=None,
             batch_tile=DEFAULT_BATCH_TILE),
        # exercises lane-masked softmax final activation.
        dict(sizes=[16, 32, 8], batch=8, batch_norm=True, final_act="softmax",
             batch_tile=DEFAULT_BATCH_TILE),
        # exercises the no-BN hidden path (with bias) + sigmoid final act.
        dict(sizes=[16, 32, 8], batch=5, batch_norm=False, final_act="sigmoid",
             batch_tile=DEFAULT_BATCH_TILE),
        # exercises the parallel batch grid (no BN, batch > tile -> 3 steps,
        # shards across v7x's two TensorCores).
        dict(sizes=[16, 32, 8], batch=384, batch_norm=False, final_act="relu",
             batch_tile=128),
    ]

    for cfg in configs:
        key, kx, kp = jax.random.split(key, 3)
        x = jax.random.normal(kx, (cfg["batch"], cfg["sizes"][0]), jnp.float32)
        params = init_mlp_params(kp, cfg["sizes"], batch_norm=cfg["batch_norm"])
        ref = _mlp_reference(x, params, batch_norm=cfg["batch_norm"],
                             final_act=cfg["final_act"])

        # Exact-f32 MXU path at the strict tolerance; bf16-MXU-input path
        # (the perf default) at a bf16-input-rounding tolerance.
        for mxu_bf16, tol in ((False, 1e-4), (True, 1e-1)):
            packed = pack_mlp_params(params, batch_norm=cfg["batch_norm"],
                                     mxu_bf16=mxu_bf16)
            out = mlp_forward(x, packed, final_act=cfg["final_act"],
                              batch_tile=cfg["batch_tile"])
            out = jax.block_until_ready(out)
            assert out.shape == (cfg["batch"], cfg["sizes"][-1])
            assert jnp.allclose(out, ref, atol=tol, rtol=tol), \
                f"mismatch vs reference for config {cfg}, mxu_bf16={mxu_bf16}"

    print("KERNEL_OK")
</pallas_src>

<mosaic_0001>
module attributes {stable_mosaic.version = 11 : i64} {
  func.func @kernel(%arg0: i32, %arg1: memref<8x128xf32, #tpu.memory_space<vmem>>, %arg2: memref<128x128xf32, #tpu.memory_space<vmem>>, %arg3: memref<1x128xf32, #tpu.memory_space<vmem>>, %arg4: memref<1x128xf32, #tpu.memory_space<vmem>>, %arg5: memref<128x128xf32, #tpu.memory_space<vmem>>, %arg6: memref<1x128xf32, #tpu.memory_space<vmem>>, %arg7: memref<1x128xf32, #tpu.memory_space<vmem>>, %arg8: memref<128x128xf32, #tpu.memory_space<vmem>>, %arg9: memref<1x128xf32, #tpu.memory_space<vmem>>, %arg10: memref<8x128xf32, #tpu.memory_space<vmem>>) attributes {dimension_semantics = [#tpu.dimension_semantics<parallel>], iteration_bounds = array<i64: 1>, scalar_prefetch = 0 : i64, scratch_operands = 0 : i64, tpu.core_type = #tpu.core_type<tc>, window_params = [{transform_indices = @transform_0, window_bounds = array<i64: 8, 128>}, {pipeline_mode = #tpu.pipeline_mode<synchronous>, transform_indices = @transform_1, window_bounds = array<i64: 128, 128>}, {pipeline_mode = #tpu.pipeline_mode<synchronous>, transform_indices = @transform_2, window_bounds = array<i64: 1, 128>}, {pipeline_mode = #tpu.pipeline_mode<synchronous>, transform_indices = @transform_3, window_bounds = array<i64: 1, 128>}, {pipeline_mode = #tpu.pipeline_mode<synchronous>, transform_indices = @transform_4, window_bounds = array<i64: 128, 128>}, {pipeline_mode = #tpu.pipeline_mode<synchronous>, transform_indices = @transform_5, window_bounds = array<i64: 1, 128>}, {pipeline_mode = #tpu.pipeline_mode<synchronous>, transform_indices = @transform_6, window_bounds = array<i64: 1, 128>}, {pipeline_mode = #tpu.pipeline_mode<synchronous>, transform_indices = @transform_7, window_bounds = array<i64: 128, 128>}, {pipeline_mode = #tpu.pipeline_mode<synchronous>, transform_indices = @transform_8, window_bounds = array<i64: 1, 128>}, {transform_indices = @transform_9, window_bounds = array<i64: 8, 128>}]} {
    %c0 = arith.constant 0 : index
    %c0_0 = arith.constant 0 : index
    %0 = vector.load %arg1[%c0, %c0_0] : memref<8x128xf32, #tpu.memory_space<vmem>>, vector<8x128xf32>
    %1 = tpu.iota {dimensions = array<i32: 1>} : vector<1x8xi32>
    %c6_i32 = arith.constant 6 : i32
    %2 = vector.broadcast %c6_i32 : i32 to vector<1x8xi32>
    %3 = arith.cmpi slt, %1, %2 : vector<1x8xi32>
    %4 = arith.extui %3 : vector<1x8xi1> to vector<1x8xi32>
    %5 = arith.sitofp %4 : vector<1x8xi32> to vector<1x8xf32>
    %c0_1 = arith.constant 0 : index
    %c0_2 = arith.constant 0 : index
    %6 = vector.load %arg2[%c0_1, %c0_2] : memref<128x128xf32, #tpu.memory_space<vmem>>, vector<128x128xf32>
    %cst = arith.constant dense<0.000000e+00> : vector<8x128xf32>
    %7 = tpu.matmul %0, %6, %cst {dimension_numbers = #tpu.dot_dimension_numbers<[1], [0], [0], [1], [0, 0, 1, 1], [], []>} : vector<8x128xf32>, vector<128x128xf32>, vector<8x128xf32> -> vector<8x128xf32>
    %c0_3 = arith.constant 0 : index
    %c0_4 = arith.constant 0 : index
    %8 = vector.load %arg3[%c0_3, %c0_4] : memref<1x128xf32, #tpu.memory_space<vmem>>, vector<1x128xf32>
    %c0_5 = arith.constant 0 : index
    %c0_6 = arith.constant 0 : index
    %9 = vector.load %arg4[%c0_5, %c0_6] : memref<1x128xf32, #tpu.memory_space<vmem>>, vector<1x128xf32>
    %cst_7 = arith.constant dense<0.000000e+00> : vector<1x128xf32>
    %10 = tpu.matmul %5, %7, %cst_7 {dimension_numbers = #tpu.dot_dimension_numbers<[1], [0], [0], [1], [0, 0, 1, 1], [], []>} : vector<1x8xf32>, vector<8x128xf32>, vector<1x128xf32> -> vector<1x128xf32>
    %11 = arith.mulf %7, %7 : vector<8x128xf32>
    %cst_8 = arith.constant dense<0.000000e+00> : vector<1x128xf32>
    %12 = tpu.matmul %5, %11, %cst_8 {dimension_numbers = #tpu.dot_dimension_numbers<[1], [0], [0], [1], [0, 0, 1, 1], [], []>} : vector<1x8xf32>, vector<8x128xf32>, vector<1x128xf32> -> vector<1x128xf32>
    %cst_9 = arith.constant 0.166666672 : f32
    %13 = vector.broadcast %cst_9 : f32 to vector<1x128xf32>
    %14 = arith.mulf %10, %13 : vector<1x128xf32>
    %cst_10 = arith.constant 0.166666672 : f32
    %15 = vector.broadcast %cst_10 : f32 to vector<1x128xf32>
    %16 = arith.mulf %12, %15 : vector<1x128xf32>
    %17 = arith.mulf %14, %14 : vector<1x128xf32>
    %18 = arith.subf %16, %17 : vector<1x128xf32>
    %cst_11 = arith.constant 0.000000e+00 : f32
    %19 = vector.broadcast %cst_11 : f32 to vector<1x128xf32>
    %20 = arith.maximumf %18, %19 : vector<1x128xf32>
    %cst_12 = arith.constant 9.99999974E-6 : f32
    %21 = vector.broadcast %cst_12 : f32 to vector<1x128xf32>
    %22 = arith.addf %20, %21 : vector<1x128xf32>
    %23 = math.rsqrt %22 : vector<1x128xf32>
    %24 = arith.mulf %8, %23 : vector<1x128xf32>
    %25 = arith.mulf %14, %24 : vector<1x128xf32>
    %26 = arith.subf %9, %25 : vector<1x128xf32>
    %27 = vector.broadcast %24 : vector<1x128xf32> to vector<8x128xf32>
    %28 = arith.mulf %7, %27 : vector<8x128xf32>
    %29 = vector.broadcast %26 : vector<1x128xf32> to vector<8x128xf32>
    %30 = arith.addf %28, %29 : vector<8x128xf32>
    %cst_13 = arith.constant 0.000000e+00 : f32
    %31 = vector.broadcast %cst_13 : f32 to vector<8x128xf32>
    %32 = arith.maximumf %30, %31 : vector<8x128xf32>
    %c0_14 = arith.constant 0 : index
    %c0_15 = arith.constant 0 : index
    %33 = vector.load %arg5[%c0_14, %c0_15] : memref<128x128xf32, #tpu.memory_space<vmem>>, vector<128x128xf32>
    %cst_16 = arith.constant dense<0.000000e+00> : vector<8x128xf32>
    %34 = tpu.matmul %32, %33, %cst_16 {dimension_numbers = #tpu.dot_dimension_numbers<[1], [0], [0], [1], [0, 0, 1, 1], [], []>} : vector<8x128xf32>, vector<128x128xf32>, vector<8x128xf32> -> vector<8x128xf32>
    %c0_17 = arith.constant 0 : index
    %c0_18 = arith.constant 0 : index
    %35 = vector.load %arg6[%c0_17, %c0_18] : memref<1x128xf32, #tpu.memory_space<vmem>>, vector<1x128xf32>
    %c0_19 = arith.constant 0 : index
    %c0_20 = arith.constant 0 : index
    %36 = vector.load %arg7[%c0_19, %c0_20] : memref<1x128xf32, #tpu.memory_space<vmem>>, vector<1x128xf32>
    %cst_21 = arith.constant dense<0.000000e+00> : vector<1x128xf32>
    %37 = tpu.matmul %5, %34, %cst_21 {dimension_numbers = #tpu.dot_dimension_numbers<[1], [0], [0], [1], [0, 0, 1, 1], [], []>} : vector<1x8xf32>, vector<8x128xf32>, vector<1x128xf32> -> vector<1x128xf32>
    %38 = arith.mulf %34, %34 : vector<8x128xf32>
    %cst_22 = arith.constant dense<0.000000e+00> : vector<1x128xf32>
    %39 = tpu.matmul %5, %38, %cst_22 {dimension_numbers = #tpu.dot_dimension_numbers<[1], [0], [0], [1], [0, 0, 1, 1], [], []>} : vector<1x8xf32>, vector<8x128xf32>, vector<1x128xf32> -> vector<1x128xf32>
    %cst_23 = arith.constant 0.166666672 : f32
    %40 = vector.broadcast %cst_23 : f32 to vector<1x128xf32>
    %41 = arith.mulf %37, %40 : vector<1x128xf32>
    %cst_24 = arith.constant 0.166666672 : f32
    %42 = vector.broadcast %cst_24 : f32 to vector<1x128xf32>
    %43 = arith.mulf %39, %42 : vector<1x128xf32>
    %44 = arith.mulf %41, %41 : vector<1x128xf32>
    %45 = arith.subf %43, %44 : vector<1x128xf32>
    %cst_25 = arith.constant 0.000000e+00 : f32
    %46 = vector.broadcast %cst_25 : f32 to vector<1x128xf32>
    %47 = arith.maximumf %45, %46 : vector<1x128xf32>
    %cst_26 = arith.constant 9.99999974E-6 : f32
    %48 = vector.broadcast %cst_26 : f32 to vector<1x128xf32>
    %49 = arith.addf %47, %48 : vector<1x128xf32>
    %50 = math.rsqrt %49 : vector<1x128xf32>
    %51 = arith.mulf %35, %50 : vector<1x128xf32>
    %52 = arith.mulf %41, %51 : vector<1x128xf32>
    %53 = arith.subf %36, %52 : vector<1x128xf32>
    %54 = vector.broadcast %51 : vector<1x128xf32> to vector<8x128xf32>
    %55 = arith.mulf %34, %54 : vector<8x128xf32>
    %56 = vector.broadcast %53 : vector<1x128xf32> to vector<8x128xf32>
    %57 = arith.addf %55, %56 : vector<8x128xf32>
    %cst_27 = arith.constant 0.000000e+00 : f32
    %58 = vector.broadcast %cst_27 : f32 to vector<8x128xf32>
    %59 = arith.maximumf %57, %58 : vector<8x128xf32>
    %c0_28 = arith.constant 0 : index
    %c0_29 = arith.constant 0 : index
    %60 = vector.load %arg8[%c0_28, %c0_29] : memref<128x128xf32, #tpu.memory_space<vmem>>, vector<128x128xf32>
    %cst_30 = arith.constant dense<0.000000e+00> : vector<8x128xf32>
    %61 = tpu.matmul %59, %60, %cst_30 {dimension_numbers = #tpu.dot_dimension_numbers<[1], [0], [0], [1], [0, 0, 1, 1], [], []>} : vector<8x128xf32>, vector<128x128xf32>, vector<8x128xf32> -> vector<8x128xf32>
    %c0_31 = arith.constant 0 : index
    %c0_32 = arith.constant 0 : index
    %62 = vector.load %arg9[%c0_31, %c0_32] : memref<1x128xf32, #tpu.memory_space<vmem>>, vector<1x128xf32>
    %63 = vector.broadcast %62 : vector<1x128xf32> to vector<8x128xf32>
    %64 = arith.addf %61, %63 : vector<8x128xf32>
    %c0_33 = arith.constant 0 : index
    %c0_34 = arith.constant 0 : index
    %65 = vector.load %arg10[%c0_33, %c0_34] : memref<8x128xf32, #tpu.memory_space<vmem>>, vector<8x128xf32>
    tpu.vector_store %arg10[%c0_33, %c0_34], %64 {strides = array<i32>} : memref<8x128xf32, #tpu.memory_space<vmem>>, vector<8x128xf32>,
    return
  }
  func.func @transform_0(%arg0: i32) -> (i32, i32) {
    %c0_i32 = arith.constant 0 : i32
    %c0_i32_0 = arith.constant 0 : i32
    return %arg0, %c0_i32 : i32, i32
  }
  func.func @transform_1(%arg0: i32) -> (i32, i32) {
    %c0_i32 = arith.constant 0 : i32
    %c0_i32_0 = arith.constant 0 : i32
    %c0_i32_1 = arith.constant 0 : i32
    return %c0_i32, %c0_i32_0 : i32, i32
  }
  func.func @transform_2(%arg0: i32) -> (i32, i32) {
    %c0_i32 = arith.constant 0 : i32
    %c0_i32_0 = arith.constant 0 : i32
    %c0_i32_1 = arith.constant 0 : i32
    return %c0_i32, %c0_i32_0 : i32, i32
  }
  func.func @transform_3(%arg0: i32) -> (i32, i32) {
    %c0_i32 = arith.constant 0 : i32
    %c0_i32_0 = arith.constant 0 : i32
    %c0_i32_1 = arith.constant 0 : i32
    return %c0_i32, %c0_i32_0 : i32, i32
  }
  func.func @transform_4(%arg0: i32) -> (i32, i32) {
    %c0_i32 = arith.constant 0 : i32
    %c0_i32_0 = arith.constant 0 : i32
    %c0_i32_1 = arith.constant 0 : i32
    return %c0_i32, %c0_i32_0 : i32, i32
  }
  func.func @transform_5(%arg0: i32) -> (i32, i32) {
    %c0_i32 = arith.constant 0 : i32
    %c0_i32_0 = arith.constant 0 : i32
    %c0_i32_1 = arith.constant 0 : i32
    return %c0_i32, %c0_i32_0 : i32, i32
  }
  func.func @transform_6(%arg0: i32) -> (i32, i32) {
    %c0_i32 = arith.constant 0 : i32
    %c0_i32_0 = arith.constant 0 : i32
    %c0_i32_1 = arith.constant 0 : i32
    return %c0_i32, %c0_i32_0 : i32, i32
  }
  func.func @transform_7(%arg0: i32) -> (i32, i32) {
    %c0_i32 = arith.constant 0 : i32
    %c0_i32_0 = arith.constant 0 : i32
    %c0_i32_1 = arith.constant 0 : i32
    return %c0_i32, %c0_i32_0 : i32, i32
  }
  func.func @transform_8(%arg0: i32) -> (i32, i32) {
    %c0_i32 = arith.constant 0 : i32
    %c0_i32_0 = arith.constant 0 : i32
    %c0_i32_1 = arith.constant 0 : i32
    return %c0_i32, %c0_i32_0 : i32, i32
  }
  func.func @transform_9(%arg0: i32) -> (i32, i32) {
    %c0_i32 = arith.constant 0 : i32
    %c0_i32_0 = arith.constant 0 : i32
    return %arg0, %c0_i32 : i32, i32
  }
}

</mosaic_0001>

<bundles_post_ra>
// kernel: _mlp_forward_impl.1
= control target key start
LH: loop header
LB: loop body
LE: loop exit
PB: predicated region body
PF: predicated region fallthrough
CT: control target
= control target key end

     0   :  { %14 = vsyncpa [#allocation3], 0  ;;  %s1285_s0 = inlined_call_operand.vmem [shape: f32[8,128], index: 0, kind: input, shape index: {}]   ;;  %s1286_s1 = inlined_call_operand.hbm [shape: f32[128,128], index: 1, kind: input, shape index: {}]   ;;  %s1287_s2 = inlined_call_operand.vmem [shape: f32[1,128], index: 2, kind: input, shape index: {}]   ;;  %s1288_s3 = inlined_call_operand.vmem [shape: f32[1,128], index: 3, kind: input, shape index: {}]   ;;  %s1289_s4 = inlined_call_operand.hbm [shape: f32[128,128], index: 4, kind: input, shape index: {}]   ;;  %s1290_s5 = inlined_call_operand.vmem [shape: f32[1,128], index: 5, kind: input, shape index: {}]   ;;  %s1291_s6 = inlined_call_operand.vmem [shape: f32[1,128], index: 6, kind: input, shape index: {}]   ;;  %s1292_s7 = inlined_call_operand.hbm [shape: f32[128,128], index: 7, kind: input, shape index: {}]   ;;  %s1293_s8 = inlined_call_operand.vmem [shape: f32[1,128], index: 8, kind: input, shape index: {}]   ;;  %s1294_s9 = inlined_call_operand.hbm [shape: f32[8,128], index: 9, kind: output, shape index: {}]  }
   0x1   :  { %15 = vsyncpa [#allocation6], 0 }
   0x2   :  { %16 = vsyncpa [#allocation4], 0  ;;  %s1071_s30 = smov [#allocation5]   ;;  %s1072_s11 = smov [#allocation2]  }
   0x3   :  { %s40_s10 = sshll.u32 %s1071_s30, 4  ;;  %s24_s12 = sshll.u32 %s1072_s11, 4  ;;  %s41_s10 = int_to_ptr.vmem [resolvable:$true] %s40_s10  ;;  %s1130_s12 = int_to_ptr.vmem [resolvable:$true] %s24_s12 }
   0x4   :  { %s977_s15 = scalar_lea.hbm %s1289_s4, 2048 }
   0x5   :  { %p978_p0 = scmp.ne.s32.totalorder %s1289_s4, %s977_s15  ;;  %p981_p1 = scmp.lt.u32.totalorder %s977_s15, %s1289_s4 }
   0x7   :  { %p983_p2 = pnand %p981_p1, %p978_p0 }
   0x9   :  { %986 = shalt.err (!%p983_p2)
}
   0xa   :  { %s987_s20 = scalar_lea.vmem %s41_s10, 2048  ;;  %p992_p4 = scmp.lt.s32.totalorder %s41_s10, %s41_s10 }
   0xb   :  { %p988_p3 = scmp.ne.s32.totalorder %s41_s10, %s987_s20  ;;  %p993_p5 = scmp.lt.s32.totalorder %s987_s20, %s987_s20 }
   0xd   :  { %p994_p6 = por %p993_p5, %p992_p4 }
   0xf   :  { %p995_p7 = pnand %p994_p6, %p988_p3 }
  0x11   :  { %998 = shalt.err (!%p995_p7)
}
  0x12   :  { %s1073_s21 = smov 128   ;;  %s1074_s22 = smov 8  }
  0x13   :  { %46 = dma.hbm_to_vmem [thread:$0]  %s1289_s4, 2048, %s41_s10, [#allocation6], %s1073_s21, %s1073_s21, %s1074_s22  }
  0x14   :  { %s999_s27 = scalar_lea.hbm %s1286_s1, 2048 }
  0x15   :  { %p1000_p8 = scmp.ne.s32.totalorder %s1286_s1, %s999_s27  ;;  %p1003_p9 = scmp.lt.u32.totalorder %s999_s27, %s1286_s1 }
  0x17   :  { %p1005_p10 = pnand %p1003_p9, %p1000_p8 }
  0x19   :  { %1008 = shalt.err (!%p1005_p10)
}
  0x1a   :  { %s1009_s13 = scalar_lea.vmem %s1130_s12, 2048  ;;  %p1014_p12 = scmp.lt.s32.totalorder %s1130_s12, %s1130_s12 }
  0x1b   :  { %p1010_p11 = scmp.ne.s32.totalorder %s1130_s12, %s1009_s13  ;;  %p1015_p13 = scmp.lt.s32.totalorder %s1009_s13, %s1009_s13 }
  0x1d   :  { %p1016_p0 = por %p1015_p13, %p1014_p12 }
  0x1f   :  { %p1017_p1 = pnand %p1016_p0, %p1010_p11 }
  0x21   :  { %1020 = shalt.err (!%p1017_p1)
}
  0x22   :  { %30 = dma.hbm_to_vmem [thread:$0]  %s1286_s1, 2048, %s1130_s12, [#allocation3], %s1073_s21, %s1073_s21, %s1074_s22  }
  0x23   :  { %s1075_s14 = smov [#allocation7]   ;;  %s1021_s18 = scalar_lea.hbm %s1292_s7, 2048 }
  0x24   :  { %s56_s15 = sshll.u32 %s1075_s14, 4  ;;  %p1022_p2 = scmp.ne.s32.totalorder %s1292_s7, %s1021_s18  ;;  %s57_s15 = int_to_ptr.vmem [resolvable:$true] %s56_s15 }
  0x25   :  { %p1025_p3 = scmp.lt.u32.totalorder %s1021_s18, %s1292_s7 }
  0x27   :  { %p1027_p4 = pnand %p1025_p3, %p1022_p2 }
  0x29   :  { %1030 = shalt.err (!%p1027_p4)
}
  0x2a   :  { %s1031_s25 = scalar_lea.vmem %s57_s15, 2048  ;;  %p1036_p6 = scmp.lt.s32.totalorder %s57_s15, %s57_s15 }
  0x2b   :  { %p1032_p5 = scmp.ne.s32.totalorder %s57_s15, %s1031_s25  ;;  %p1037_p7 = scmp.lt.s32.totalorder %s1031_s25, %s1031_s25 }
  0x2d   :  { %p1038_p8 = por %p1037_p7, %p1036_p6 }
  0x2f   :  { %p1039_p9 = pnand %p1038_p8, %p1032_p5 }
  0x31   :  { %1042 = shalt.err (!%p1039_p9)
}
  0x32   :  { %62 = dma.hbm_to_vmem [thread:$0]  %s1292_s7, 2048, %s57_s15, [#allocation6], %s1073_s21, %s1073_s21, %s1074_s22  }
  0x33   :  { %1065 = dma.done.wait [#allocation3], 2048  }
  0x34   :  { %1066 = vsyncadd [#allocation3], 4294965248 }
  0x35   :  { %1067 = dma.done.wait [#allocation6], 4096  }
  0x36   :  { %1068 = vsyncadd [#allocation6], 4294963200  ;;  %v1076_v0 = vmov 0.0|0.0   ;;  %vm1077_vm0 = vmmov 0   ;;  %v1078_v1 = vmov 0.0   ;;  %v80_v2 = vld [vmem:[#allocation2] sm:$0xff]  ;;  %v75_v27 = vlaneseq }
  0x37   :  { %892 = vmatprep.subr.bf16.mxu0 %v1076_v0  ;;  %799 = vmatprep.mubr.msk.f32.mxu0 %vm1077_vm0, %v1078_v1  ;;  %v81_v3 = vld [vmem:[#allocation2 + $0x8] sm:$0xff]  ;;  %v82_v4 = vld [vmem:[#allocation2 + $0x10] sm:$0xff]  ;;  %v83_v6 = vld [vmem:[#allocation2 + $0x18] sm:$0xff]  ;;  %vm168_vm2 = vcmask 64512  }
  0x38   :  { %916 = vmatprep.subr.bf16.mxu1 %v1076_v0  ;;  %844 = vmatprep.mubr.msk.f32.mxu1 %vm1077_vm0, %v1078_v1  ;;  %v893_v5 = vpack.c.bf16 %v81_v3, %v80_v2  ;;  %v896_v7 = vpack.c.bf16 %v83_v6, %v82_v4  ;;  %v84_v8 = vld [vmem:[#allocation2 + $0x20] sm:$0xff]  ;;  %v85_v9 = vld [vmem:[#allocation2 + $0x28] sm:$0xff]  ;;  %v86_v11 = vld [vmem:[#allocation2 + $0x30] sm:$0xff]  ;;  %v76_v28 = vand.u32 127, %v75_v27 }
  0x39   :  { %v899_v10 = vpack.c.bf16 %v85_v9, %v84_v8  ;;  %v87_v12 = vld [vmem:[#allocation2 + $0x38] sm:$0xff]  ;;  %v88_v14 = vld [vmem:[#allocation2 + $0x40] sm:$0xff]  ;;  %v89_v15 = vld [vmem:[#allocation2 + $0x48] sm:$0xff] }
  0x3a   :  { %894 = vmatpush3.bf16.msra.mxu0 %v893_v5  ;;  %v902_v13 = vpack.c.bf16 %v87_v12, %v86_v11  ;;  %v905_v16 = vpack.c.bf16 %v89_v15, %v88_v14  ;;  %v90_v17 = vld [vmem:[#allocation2 + $0x50] sm:$0xff]  ;;  %v91_v18 = vld [vmem:[#allocation2 + $0x58] sm:$0xff]  ;;  %v92_v20 = vld [vmem:[#allocation2 + $0x60] sm:$0xff]  ;;  %vm77_vm1 = vcmp.lt.s32.totalorder %v76_v28, 6  ;;  %v325_v5 = vshrl.u32 %v75_v27, 7 }
  0x3b   :  { %895 = vmatprep.subr.bf16.mxu0 %v1076_v0  ;;  %v908_v19 = vpack.c.bf16 %v91_v18, %v90_v17  ;;  %v93_v21 = vld [vmem:[#allocation2 + $0x68] sm:$0xff]  ;;  %v94_v23 = vld [vmem:[#allocation2 + $0x70] sm:$0xff]  ;;  %v95_v24 = vld [vmem:[#allocation2 + $0x78] sm:$0xff]  ;;  %v1203_v29 = vsel %vm77_vm1, 1.0, %v1078_v1 }
  0x3c   :  { %v911_v22 = vpack.c.bf16 %v93_v21, %v92_v20  ;;  %v914_v25 = vpack.c.bf16 %v95_v24, %v94_v23  ;;  %v74_v26 = vld [vmem:[%s1285_s0] sm:$0xff]  ;;  %v339_v34 = vld [vmem:[#allocation5 + $0x8] sm:$0xff]  ;;  %v340_v36 = vld [vmem:[#allocation5 + $0x10] sm:$0xff] }
  0x3d   :  { %v338_v33 = vld [vmem:[#allocation5] sm:$0xff]  ;;  %v341_v37 = vld [vmem:[#allocation5 + $0x18] sm:$0xff]  ;;  %v343_v40 = vld [vmem:[#allocation5 + $0x28] sm:$0xff] }
  0x3e   :  { %897 = vmatpush3.bf16.msra.mxu0 %v896_v7  ;;  %v917_v35 = vpack.c.bf16 %v339_v34, %v338_v33  ;;  %v920_v38 = vpack.c.bf16 %v341_v37, %v340_v36  ;;  %v342_v39 = vld [vmem:[#allocation5 + $0x20] sm:$0xff]  ;;  %v344_v42 = vld [vmem:[#allocation5 + $0x30] sm:$0xff]  ;;  %v345_v43 = vld [vmem:[#allocation5 + $0x38] sm:$0xff]  ;;  %v1232_v7 = vsub.s32 0, %v325_v5 }
  0x3f   :  { %898 = vmatprep.subr.bf16.mxu0 %v1076_v0  ;;  %v923_v41 = vpack.c.bf16 %v343_v40, %v342_v39  ;;  %v926_v44 = vpack.c.bf16 %v345_v43, %v344_v42  ;;  %v346_v45 = vld [vmem:[#allocation5 + $0x40] sm:$0xff]  ;;  %v347_v46 = vld [vmem:[#allocation5 + $0x48] sm:$0xff]  ;;  %v348_v48 = vld [vmem:[#allocation5 + $0x50] sm:$0xff] }
  0x40   :  { %918 = vmatpush3.bf16.msra.mxu1 %v917_v35  ;;  %v929_v47 = vpack.c.bf16 %v347_v46, %v346_v45  ;;  %v349_v49 = vld [vmem:[#allocation5 + $0x58] sm:$0xff]  ;;  %v350_v51 = vld [vmem:[#allocation5 + $0x60] sm:$0xff]  ;;  %v351_v52 = vld [vmem:[#allocation5 + $0x68] sm:$0xff] }
  0x41   :  { %919 = vmatprep.subr.bf16.mxu1 %v1076_v0  ;;  %v932_v50 = vpack.c.bf16 %v349_v49, %v348_v48  ;;  %v935_v53 = vpack.c.bf16 %v351_v52, %v350_v51  ;;  %v352_v54 = vld [vmem:[#allocation5 + $0x70] sm:$0xff]  ;;  %v353_v55 = vld [vmem:[#allocation5 + $0x78] sm:$0xff]  ;;  %v166_v6 = vld [vmem:[%s1287_s2] sm:$0x1] }
  0x42   :  { %900 = vmatpush3.bf16.msra.mxu0 %v899_v10  ;;  %v938_v56 = vpack.c.bf16 %v353_v55, %v352_v54  ;;  %v167_v10 = vld [vmem:[%s1288_s3] sm:$0x1]  ;;  %v594_v24 = vld [vmem:[#allocation7 + $0x10] sm:$0xff]  ;;  %v597_v28 = vld [vmem:[#allocation7 + $0x28] sm:$0xff] }
  0x43   :  { %901 = vmatprep.subr.bf16.mxu0 %v1076_v0  ;;  %v592_v21 = vld [vmem:[#allocation7] sm:$0xff]  ;;  %v601_v33 = vld [vmem:[#allocation7 + $0x48] sm:$0xff]  ;;  %v602_v35 = vld [vmem:[#allocation7 + $0x50] sm:$0xff] }
  0x44   :  { %921 = vmatpush3.bf16.msra.mxu1 %v920_v38  ;;  %v596_v27 = vld [vmem:[#allocation7 + $0x20] sm:$0xff]  ;;  %v603_v36 = vld [vmem:[#allocation7 + $0x58] sm:$0xff]  ;;  %v605_v39 = vld [vmem:[#allocation7 + $0x68] sm:$0xff] }
  0x45   :  { %922 = vmatprep.subr.bf16.mxu1 %v1076_v0  ;;  %v956_v37 = vpack.c.bf16 %v603_v36, %v602_v35  ;;  %v604_v38 = vld [vmem:[#allocation7 + $0x60] sm:$0xff]  ;;  %v607_v42 = vld [vmem:[#allocation7 + $0x78] sm:$0xff] }
  0x46   :  { %903 = vmatpush3.bf16.msra.mxu0 %v902_v13  ;;  %v959_v40 = vpack.c.bf16 %v605_v39, %v604_v38  ;;  %v424_v54 = vld [vmem:[%s1290_s5] sm:$0x1]  ;;  %s1079_s5 = smov [#allocation8]  }
  0x47   :  { %904 = vmatprep.subr.bf16.mxu0 %v1076_v0  ;;  %s692_s13 = sshll.u32 %s1079_s5, 4  ;;  %s693_s13 = int_to_ptr.vmem [resolvable:$true] %s692_s13 }
  0x48   :  { %924 = vmatpush3.bf16.msra.mxu1 %v923_v41  ;;  %v606_v41 = vld [vmem:[#allocation7 + $0x70] sm:$0xff]  ;;  %p1048_p11 = scmp.lt.s32.totalorder %s693_s13, %s693_s13 }
  0x49   :  { %925 = vmatprep.subr.bf16.mxu1 %v1076_v0  ;;  %v962_v43 = vpack.c.bf16 %v607_v42, %v606_v41 }
  0x4a   :  { %906 = vmatpush3.bf16.msra.mxu0 %v905_v16 }
  0x4b   :  { %907 = vmatprep.subr.bf16.mxu0 %v1076_v0 }
  0x4c   :  { %927 = vmatpush3.bf16.msra.mxu1 %v926_v44 }
  0x4d   :  { %928 = vmatprep.subr.bf16.mxu1 %v1076_v0 }
  0x4e   :  { %909 = vmatpush3.bf16.msra.mxu0 %v908_v19 }
  0x4f   :  { %910 = vmatprep.subr.bf16.mxu0 %v1076_v0 }
  0x50   :  { %930 = vmatpush3.bf16.msra.mxu1 %v929_v47 }
  0x51   :  { %931 = vmatprep.subr.bf16.mxu1 %v1076_v0 }
  0x52   :  { %912 = vmatpush3.bf16.msra.mxu0 %v911_v22  ;;  %v593_v22 = vld [vmem:[#allocation7 + $0x8] sm:$0xff] }
  0x53   :  { %913 = vmatprep.subr.bf16.mxu0 %v1076_v0  ;;  %v941_v23 = vpack.c.bf16 %v593_v22, %v592_v21 }
  0x54   :  { %933 = vmatpush3.bf16.msra.mxu1 %v932_v50 }
  0x55   :  { %934 = vmatprep.subr.bf16.mxu1 %v1076_v0 }
  0x56   :  { %915 = vmatpush3.bf16.msra.mxu0 %v914_v25  ;;  %v595_v25 = vld [vmem:[#allocation7 + $0x18] sm:$0xff] }
  0x57   :  { %802 = vmatprep.subr.mxu0 %v1078_v1 }
  0x58   :  { %936 = vmatpush3.bf16.msra.mxu1 %v935_v53 }
  0x59   :  { %800 = vmatmul.mubr.f32.vlgmr.msra.gmra.mrb[0].mxu0 %v74_v26  ;;  %937 = vmatprep.subr.bf16.mxu1 %v1076_v0  ;;  %v944_v26 = vpack.c.bf16 %v595_v25, %v594_v24 }
  0x5a   :  { %804 = vmatprep.mubr.msk.f32.mxu0 %vm1077_vm0, %v1078_v1 }
  0x5c   :  { %939 = vmatpush3.bf16.msra.mxu1 %v938_v56 }
  0x5d   :  { %940 = vmatprep.subr.bf16.mxu1 %v1076_v0 }
 0x12c   :  { %v1205_v30 = vpop.f32.mrb[0].mxu0 }
 0x12d   :  { %v242_v31 = vmul.f32 %v1205_v30, %v1205_v30  ;;  %v801_v32 = vpop.f32.mrb[1].mxu0  ;;  %803 = vmatpush3.msra.mxu0 %v1205_v30 }
 0x12e   :  { %805 = vmatmul.mubr.msk.f32.vlgmr.msra.gmra.mrb[2].mxu0 %vm168_vm2, %v1203_v29  ;;  %807 = vmatprep.subr.mxu0 %v1078_v1  ;;  %v600_v32 = vld [vmem:[#allocation7 + $0x40] sm:$0xff] }
 0x12f   :  { %808 = vmatpush3.msra.mxu0 %v242_v31  ;;  %809 = vmatprep.mubr.msk.f32.mxu0 %vm1077_vm0, %v1078_v1  ;;  %v599_v31 = vld [vmem:[#allocation7 + $0x38] sm:$0xff]  ;;  %v953_v34 = vpack.c.bf16 %v601_v33, %v600_v32 }
 0x130   :  { %847 = vmatprep.subr.mxu0 %v1078_v1 }
 0x132   :  { %810 = vmatmul.mubr.msk.f32.vlgmr.msra.gmra.mrb[4].mxu0 %vm168_vm2, %v1203_v29 }
 0x133   :  { %849 = vmatprep.mubr.msk.f32.mxu0 %vm1077_vm0, %v1078_v1 }
 0x201   :  { %v238_v57 = vpop.f32.mrb[2].mxu0 }
 0x202   :  { %v313_v58 = vmul.f32 0.16666667, %v238_v57  ;;  %v806_v59 = vpop.f32.mrb[3].mxu0 }
 0x204   :  { %v315_v61 = vmul.f32 %v313_v58, %v313_v58 }
 0x205   :  { %v309_v60 = vpop.f32.mrb[4].mxu0 }
 0x206   :  { %v314_v62 = vmul.f32 0.16666667, %v309_v60  ;;  %v811_v63 = vpop.f32.mrb[5].mxu0 }
 0x208   :  { %v316_v2 = vsub.f32 %v314_v62, %v315_v61 }
 0x20a   :  { %v317_v3 = vmax.f32 %v316_v2, 0.0  ;;  %v707_v2 = vld [vmem:[%s1293_s8] ss:$0 sm:$0xff] }
 0x20c   :  { %v318_v4 = vadd.f32 1e-05, %v317_v3 }
 0x20e   :  { %973 = vrsqrt.f32 %v318_v4 }
 0x218   :  { %v974_v8 = vpop.eup %973 }
 0x219   :  { %v320_v9 = vmul.f32 %v974_v8, %v166_v6 }
 0x21b   :  { %v321_v11 = vmul.f32 %v320_v9, %v313_v58  ;;  %v327_v12 = vrot.slane %v320_v9, %v1232_v7 }
 0x21d   :  { %v322_v13 = vsub.f32 %v167_v10, %v321_v11  ;;  %v329_v14 = vmul.f32 %v327_v12, %v1205_v30  ;;  %v947_v30 = vpack.c.bf16 %v597_v28, %v596_v27 }
 0x21f   :  { %v334_v15 = vrot.slane %v322_v13, %v1232_v7 }
 0x221   :  { %v336_v16 = vadd.f32 %v334_v15, %v329_v14 }
 0x223   :  { %v337_v17 = vmax.f32 %v336_v16, 0.0 }
 0x225   :  { %845 = vmatmul.mubr.f32.vlgmr.msra.gmra.mrb[0].mxu1 %v337_v17 }
 0x226   :  { %889 = vmatprep.mubr.msk.f32.mxu1 %vm1077_vm0, %v1078_v1  ;;  %942 = vmatpush3.bf16.msra.mxu1 %v941_v23 }
 0x227   :  { %943 = vmatprep.subr.bf16.mxu1 %v1076_v0 }
 0x22a   :  { %945 = vmatpush3.bf16.msra.mxu1 %v944_v26 }
 0x22b   :  { %946 = vmatprep.subr.bf16.mxu1 %v1076_v0 }
 0x22e   :  { %948 = vmatpush3.bf16.msra.mxu1 %v947_v30 }
 0x22f   :  { %949 = vmatprep.subr.bf16.mxu1 %v1076_v0 }
 0x2f8   :  { %v1242_v18 = vpop.f32.mrb[0].mxu1 }
 0x2f9   :  { %v496_v19 = vmul.f32 %v1242_v18, %v1242_v18  ;;  %v846_v20 = vpop.f32.mrb[1].mxu1  ;;  %848 = vmatpush3.msra.mxu0 %v1242_v18 }
 0x2fa   :  { %850 = vmatmul.mubr.msk.f32.vlgmr.msra.gmra.mrb[6].mxu0 %vm168_vm2, %v1203_v29  ;;  %852 = vmatprep.subr.mxu0 %v1078_v1 }
 0x2fb   :  { %853 = vmatpush3.msra.mxu0 %v496_v19  ;;  %854 = vmatprep.mubr.msk.f32.mxu0 %vm1077_vm0, %v1078_v1  ;;  %v598_v1 = vld [vmem:[#allocation7 + $0x30] sm:$0xff] }
 0x2fe   :  { %855 = vmatmul.mubr.msk.f32.vlgmr.msra.gmra.mrb[8].mxu0 %vm168_vm2, %v1203_v29  ;;  %v950_v29 = vpack.c.bf16 %v599_v31, %v598_v1 }
 0x300   :  { %951 = vmatpush3.bf16.msra.mxu1 %v950_v29 }
 0x301   :  { %952 = vmatprep.subr.bf16.mxu1 %v1076_v0 }
 0x304   :  { %954 = vmatpush3.bf16.msra.mxu1 %v953_v34 }
 0x305   :  { %955 = vmatprep.subr.bf16.mxu1 %v1076_v0 }
 0x308   :  { %957 = vmatpush3.bf16.msra.mxu1 %v956_v37 }
 0x309   :  { %958 = vmatprep.subr.bf16.mxu1 %v1076_v0 }
 0x30c   :  { %960 = vmatpush3.bf16.msra.mxu1 %v959_v40 }
 0x30d   :  { %961 = vmatprep.subr.bf16.mxu1 %v1076_v0  ;;  %v425_v0 = vld [vmem:[%s1291_s6] sm:$0x1]  ;;  %s1043_s6 = scalar_lea.vmem %s693_s13, 128 }
 0x30e   :  { %p1044_p10 = scmp.ne.s32.totalorder %s693_s13, %s1043_s6  ;;  %p1049_p12 = scmp.lt.s32.totalorder %s1043_s6, %s1043_s6 }
 0x310   :  { %963 = vmatpush3.bf16.msra.mxu1 %v962_v43  ;;  %p1050_p13 = por %p1049_p12, %p1048_p11 }
 0x312   :  { %p1051_p0 = pnand %p1050_p13, %p1044_p10 }
 0x3cd   :  { %v492_v44 = vpop.f32.mrb[6].mxu0 }
 0x3ce   :  { %v567_v45 = vmul.f32 0.16666667, %v492_v44  ;;  %v851_v46 = vpop.f32.mrb[7].mxu0 }
 0x3d0   :  { %v569_v48 = vmul.f32 %v567_v45, %v567_v45 }
 0x3d1   :  { %v563_v47 = vpop.f32.mrb[8].mxu0 }
 0x3d2   :  { %v568_v49 = vmul.f32 0.16666667, %v563_v47  ;;  %v856_v50 = vpop.f32.mrb[9].mxu0 }
 0x3d4   :  { %v570_v51 = vsub.f32 %v568_v49, %v569_v48 }
 0x3d6   :  { %v571_v52 = vmax.f32 %v570_v51, 0.0 }
 0x3d8   :  { %v572_v53 = vadd.f32 1e-05, %v571_v52 }
 0x3da   :  { %975 = vrsqrt.f32 %v572_v53 }
 0x3e4   :  { %v976_v55 = vpop.eup %975 }
 0x3e5   :  { %v574_v56 = vmul.f32 %v976_v55, %v424_v54 }
 0x3e7   :  { %v575_v57 = vmul.f32 %v574_v56, %v567_v45  ;;  %v581_v58 = vrot.slane %v574_v56, %v1232_v7 }
 0x3e9   :  { %v576_v59 = vsub.f32 %v425_v0, %v575_v57  ;;  %v583_v60 = vmul.f32 %v581_v58, %v1242_v18 }
 0x3eb   :  { %v588_v61 = vrot.slane %v576_v59, %v1232_v7 }
 0x3ed   :  { %v590_v62 = vadd.f32 %v588_v61, %v583_v60 }
 0x3ef   :  { %v591_v63 = vmax.f32 %v590_v62, 0.0 }
 0x3f1   :  { %890 = vmatmul.mubr.f32.vlgmr.msra.gmra.mrb[2].mxu1 %v591_v63 }
 0x4c4   :  { %v681_v3 = vpop.f32.mrb[2].mxu1 }
 0x4c5   :  { %v682_v4 = vadd.f32 %v707_v2, %v681_v3  ;;  %v891_v5 = vpop.f32.mrb[3].mxu1 }
 0x4c7   :  { %685 = vst [vmem:[#allocation8] sm:$0xff] %v682_v4 }
 0x4c8   :  { %1054 = shalt.err (!%p1051_p0)
}
 0x4c9   :  { %s1055_s14 = scalar_lea.hbm %s1294_s9, 128 }
 0x4ca   :  { %p1056_p1 = scmp.ne.s32.totalorder %s1294_s9, %s1055_s14  ;;  %p1059_p2 = scmp.lt.u32.totalorder %s1055_s14, %s1294_s9 }
 0x4cc   :  { %p1061_p3 = pnand %p1059_p2, %p1056_p1 }
 0x4ce   :  { %1064 = shalt.err (!%p1061_p3)
}
 0x4cf   :  { %695 = dma.vmem_to_hbm [thread:$0]  %s693_s13, 128, %s1294_s9, [#allocation4]  }
 0x4d0   :  { %1069 = dma.done.wait [#allocation4], 128  }
 0x4d1   :  { %1070 = vsyncadd [#allocation4], 4294967168 }
 0x4d2   :  { %699 = vsyncpa [#allocation3], 1 }
 0x4d3   :  { %700 = vsyncpa [#allocation6], 1 }
 0x4d4   :  { %701 = vsyncpa [#allocation4], 1 }

</bundles_post_ra>
